<compile_context>
chip_gen: v7x
topology: tpu7x:2x2x1
jax: 0.10.0
libtpu: 0.0.40
codegen_flags: <defaults>
</compile_context>

<pallas_src>
import functools

import jax
import jax.numpy as jnp
from jax.experimental import pallas as pl
from jax.experimental.pallas import tpu as pltpu

PAD = 128  # lane-dense padding for hidden / fused heads


def _actor_critic_kernel(x_ref, w_ref, b_ref, out_ref, *, in_dim, out_dim):
    # x_ref : [TM, in_dim] f32   raw (un-padded) observation rows
    # w_ref : [3, 128, 128] bf16 stacked zero-padded weights (shared1, shared2, heads)
    # b_ref : [8, 128] f32       stacked zero-padded biases (rows 0..2 used)
    # out_ref: [TM, 128] f32     lane-dense slab: policy | value | zeros
    x = x_ref[...]
    b = b_ref[...]

    # ---- shared layer 1: unrolled VPU FMA over the tiny feature dim ----
    # (padded weight columns are zero -> exact; avoids any MXU / lane padding)
    w1 = w_ref[0]                                   # [128,128] bf16, rows [:in_dim] used
    acc = x[:, 0:1] * w1[0:1, :]                    # f32 * bf16 -> f32, [TM,128]
    for f in range(1, in_dim):                      # static unroll (in_dim is tiny)
        acc = acc + x[:, f:f + 1] * w1[f:f + 1, :]
    h = jnp.maximum(acc + b[0:1], 0.0)

    # ---- shared layer 2: bf16 MXU matmul, f32 accumulate ----
    h = jnp.dot(h.astype(jnp.bfloat16), w_ref[1],
                preferred_element_type=jnp.float32) + b[1:2]
    h = jnp.maximum(h, 0.0)

    # ---- fused actor+critic head: one MXU pass ----
    # lanes [0:out_dim) = actor logits, lane out_dim = critic value.
    head = jnp.dot(h.astype(jnp.bfloat16), w_ref[2],
                   preferred_element_type=jnp.float32) + b[2:3]

    # single-vreg lane index; compares broadcast against [TM,128] values
    lane = jax.lax.broadcasted_iota(jnp.int32, (1, PAD), 1)
    is_logit = lane < out_dim

    # numerically stable softmax over the real logit lanes only
    logits = jnp.where(is_logit, head, -jnp.inf)
    m = jnp.max(logits, axis=-1, keepdims=True)
    e = jnp.exp(logits - m)                         # padded lanes -> exp(-inf) = 0
    inv = pl.reciprocal(jnp.sum(e, axis=-1, keepdims=True), approx=True)
    policy = e * inv

    # single unmasked 128-lane store: policy in [0:out_dim), value in lane out_dim
    out_ref[...] = jnp.where(lane == out_dim, head, policy)


def actor_critic_forward(x, params, *, tm_max=2048, min_tiles=2):
    """Runs the full forward pass as one Pallas kernel, tiled over batch."""
    batch, in_dim = x.shape
    out_dim = params["out_dim"]
    w_stack = params["w"]     # [3, 128, 128] bf16
    b_stack = params["b"]     # [8, 128] f32

    # fused-head / lane-padding layout assumptions
    assert in_dim <= PAD, "input_dim must fit in one 128-lane tile"
    assert out_dim + 1 <= PAD, "actor logits + critic value must fit in 128 lanes"

    # ---- tile selection ----
    # minimize batch padding; keep >=2 grid steps when there is enough work so
    # v7x can shard batch tiles across both TensorCores ("parallel" grid axis).
    num_tiles = max((batch + tm_max - 1) // tm_max,
                    min_tiles if batch >= 2 * 8 else 1)
    rows_per_tile = (batch + num_tiles - 1) // num_tiles
    tm = max(8, ((rows_per_tile + 7) // 8) * 8)
    num_tiles = (batch + tm - 1) // tm
    b_pad = num_tiles * tm

    # pad only the batch dim (in_dim stays narrow -> ~16 B/row of extra HBM)
    if b_pad != batch:
        x = jnp.pad(x, ((0, b_pad - batch), (0, 0)))

    slab = pl.pallas_call(
        functools.partial(_actor_critic_kernel, in_dim=in_dim, out_dim=out_dim),
        out_shape=jax.ShapeDtypeStruct((b_pad, PAD), jnp.float32),
        grid=(num_tiles,),
        in_specs=[
            pl.BlockSpec((tm, in_dim), lambda i: (i, 0)),        # raw x tile, no lane pad
            pl.BlockSpec((3, PAD, PAD), lambda i: (0, 0, 0)),    # weights, resident
            pl.BlockSpec((8, PAD), lambda i: (0, 0)),            # biases, resident
        ],
        out_specs=pl.BlockSpec((tm, PAD), lambda i: (i, 0)),
        compiler_params=pltpu.CompilerParams(
            dimension_semantics=("parallel",),       # v7x: shard tiles over 2 TCs
            vmem_limit_bytes=32 * 1024 * 1024),      # clears v5e's 16 MiB default
    )(x, w_stack, b_stack)

    # NOTE: these two slices are separate XLA reads of the slab; consumers that
    # can take the slab directly avoid the extra pass.
    policy = slab[:batch, :out_dim]
    value = slab[:batch, out_dim:out_dim + 1]
    return policy, value


def init_params(key, input_dim, output_dim, hidden=64):
    """nn.Linear-style init, packed into lane-padded stacked arrays (weights bf16)."""
    assert hidden <= PAD and input_dim <= PAD and output_dim + 1 <= PAD

    def linear(k, fan_in, fan_out):
        kw, kb = jax.random.split(k)
        bound = 1.0 / jnp.sqrt(float(fan_in))
        w = jax.random.uniform(kw, (fan_in, fan_out), jnp.float32, -bound, bound)
        b = jax.random.uniform(kb, (fan_out,), jnp.float32, -bound, bound)
        return w, b

    k1, k2, k3, k4 = jax.random.split(key, 4)
    w1, b1 = linear(k1, input_dim, hidden)     # [in, 64]
    w2, b2 = linear(k2, hidden, hidden)        # [64, 64]
    wa, ba = linear(k3, hidden, output_dim)    # [64, out]
    wc, bc = linear(k4, hidden, 1)             # [64, 1]

    # pack: W[0]=shared1, W[1]=shared2, W[2]=[actor | critic] (zero-padded)
    w = jnp.zeros((3, PAD, PAD), jnp.float32)
    w = w.at[0, :input_dim, :hidden].set(w1)
    w = w.at[1, :hidden, :hidden].set(w2)
    w = w.at[2, :hidden, :output_dim].set(wa)
    w = w.at[2, :hidden, output_dim:output_dim + 1].set(wc)
    w = w.astype(jnp.bfloat16)                 # single-pass MXU operands

    b = jnp.zeros((8, PAD), jnp.float32)
    b = b.at[0, :hidden].set(b1)
    b = b.at[1, :hidden].set(b2)
    b = b.at[2, :output_dim].set(ba)
    b = b.at[2, output_dim].set(bc[0])

    return {
        "w": w, "b": b, "out_dim": output_dim,
        # raw f32 params kept only for the plain-JAX reference check
        "w1": w1, "b1": b1, "w2": w2, "b2": b2,
        "wa": wa, "ba": ba, "wc": wc, "bc": bc,
    }


def _reference_forward(x, p):
    """Plain-JAX f32 reference mirroring the PyTorch forward."""
    h = jnp.maximum(x @ p["w1"] + p["b1"], 0.0)
    h = jnp.maximum(h @ p["w2"] + p["b2"], 0.0)
    logits = h @ p["wa"] + p["ba"]
    policy = jax.nn.softmax(logits, axis=-1)
    value = h @ p["wc"] + p["bc"]
    return policy, value


if __name__ == "__main__":
    input_dim = 4    # CartPole observation dim
    output_dim = 2   # CartPole action dim
    batch = 2

    key = jax.random.PRNGKey(0)
    k_params, k_x = jax.random.split(key)
    params = init_params(k_params, input_dim, output_dim)
    x = jax.random.normal(k_x, (batch, input_dim), jnp.float32)

    policy, value = actor_critic_forward(x, params)
    policy = jax.block_until_ready(policy)
    value = jax.block_until_ready(value)

    ref_policy, ref_value = _reference_forward(x, params)
    assert policy.shape == (batch, output_dim)
    assert value.shape == (batch, 1)
    # bf16 MXU operands + EUP approximate reciprocal -> modest tolerances vs f32 ref
    assert jnp.allclose(policy, ref_policy, atol=1e-2, rtol=1e-2)
    assert jnp.allclose(value, ref_value, atol=1e-2, rtol=1e-2)
    assert jnp.allclose(jnp.sum(policy, axis=-1), 1.0, atol=5e-3)

    print("KERNEL_OK")
</pallas_src>

<mosaic_0001>
module attributes {stable_mosaic.version = 11 : i64} {
  func.func @_actor_critic_kernel(%arg0: i32, %arg1: memref<8x4xf32, #tpu.memory_space<vmem>>, %arg2: memref<3x128x128xbf16, #tpu.memory_space<vmem>>, %arg3: memref<8x128xf32, #tpu.memory_space<vmem>>, %arg4: memref<8x128xf32, #tpu.memory_space<vmem>>) attributes {dimension_semantics = [#tpu.dimension_semantics<parallel>], iteration_bounds = array<i64: 1>, scalar_prefetch = 0 : i64, scratch_operands = 0 : i64, tpu.core_type = #tpu.core_type<tc>, window_params = [{transform_indices = @transform_0, window_bounds = array<i64: 8, 4>}, {pipeline_mode = #tpu.pipeline_mode<synchronous>, transform_indices = @transform_1, window_bounds = array<i64: 3, 128, 128>}, {pipeline_mode = #tpu.pipeline_mode<synchronous>, transform_indices = @transform_2, window_bounds = array<i64: 8, 128>}, {transform_indices = @transform_3, window_bounds = array<i64: 8, 128>}]} {
    %c0 = arith.constant 0 : index
    %c0_0 = arith.constant 0 : index
    %0 = vector.load %arg1[%c0, %c0_0] : memref<8x4xf32, #tpu.memory_space<vmem>>, vector<8x4xf32>
    %c0_1 = arith.constant 0 : index
    %c0_2 = arith.constant 0 : index
    %1 = vector.load %arg3[%c0_1, %c0_2] : memref<8x128xf32, #tpu.memory_space<vmem>>, vector<8x128xf32>
    %c0_3 = arith.constant 0 : index
    %c0_4 = arith.constant 0 : index
    %c0_5 = arith.constant 0 : index
    %2 = vector.load %arg2[%c0_3, %c0_4, %c0_5] : memref<3x128x128xbf16, #tpu.memory_space<vmem>>, vector<1x128x128xbf16>
    %3 = vector.shape_cast %2 : vector<1x128x128xbf16> to vector<128x128xbf16>
    %4 = vector.extract_strided_slice %0 {offsets = [0, 0], sizes = [8, 1], strides = [1, 1]} : vector<8x4xf32> to vector<8x1xf32>
    %5 = vector.extract_strided_slice %3 {offsets = [0, 0], sizes = [1, 128], strides = [1, 1]} : vector<128x128xbf16> to vector<1x128xbf16>
    %6 = arith.extf %5 : vector<1x128xbf16> to vector<1x128xf32>
    %7 = vector.broadcast %4 : vector<8x1xf32> to vector<8x128xf32>
    %8 = vector.broadcast %6 : vector<1x128xf32> to vector<8x128xf32>
    %9 = arith.mulf %7, %8 : vector<8x128xf32>
    %10 = vector.extract_strided_slice %0 {offsets = [0, 1], sizes = [8, 1], strides = [1, 1]} : vector<8x4xf32> to vector<8x1xf32>
    %11 = vector.extract_strided_slice %3 {offsets = [1, 0], sizes = [1, 128], strides = [1, 1]} : vector<128x128xbf16> to vector<1x128xbf16>
    %12 = arith.extf %11 : vector<1x128xbf16> to vector<1x128xf32>
    %13 = vector.broadcast %10 : vector<8x1xf32> to vector<8x128xf32>
    %14 = vector.broadcast %12 : vector<1x128xf32> to vector<8x128xf32>
    %15 = arith.mulf %13, %14 : vector<8x128xf32>
    %16 = arith.addf %9, %15 : vector<8x128xf32>
    %17 = vector.extract_strided_slice %0 {offsets = [0, 2], sizes = [8, 1], strides = [1, 1]} : vector<8x4xf32> to vector<8x1xf32>
    %18 = vector.extract_strided_slice %3 {offsets = [2, 0], sizes = [1, 128], strides = [1, 1]} : vector<128x128xbf16> to vector<1x128xbf16>
    %19 = arith.extf %18 : vector<1x128xbf16> to vector<1x128xf32>
    %20 = vector.broadcast %17 : vector<8x1xf32> to vector<8x128xf32>
    %21 = vector.broadcast %19 : vector<1x128xf32> to vector<8x128xf32>
    %22 = arith.mulf %20, %21 : vector<8x128xf32>
    %23 = arith.addf %16, %22 : vector<8x128xf32>
    %24 = vector.extract_strided_slice %0 {offsets = [0, 3], sizes = [8, 1], strides = [1, 1]} : vector<8x4xf32> to vector<8x1xf32>
    %25 = vector.extract_strided_slice %3 {offsets = [3, 0], sizes = [1, 128], strides = [1, 1]} : vector<128x128xbf16> to vector<1x128xbf16>
    %26 = arith.extf %25 : vector<1x128xbf16> to vector<1x128xf32>
    %27 = vector.broadcast %24 : vector<8x1xf32> to vector<8x128xf32>
    %28 = vector.broadcast %26 : vector<1x128xf32> to vector<8x128xf32>
    %29 = arith.mulf %27, %28 : vector<8x128xf32>
    %30 = arith.addf %23, %29 : vector<8x128xf32>
    %31 = vector.extract_strided_slice %1 {offsets = [0, 0], sizes = [1, 128], strides = [1, 1]} : vector<8x128xf32> to vector<1x128xf32>
    %32 = vector.broadcast %31 : vector<1x128xf32> to vector<8x128xf32>
    %33 = arith.addf %30, %32 : vector<8x128xf32>
    %cst = arith.constant 0.000000e+00 : f32
    %34 = vector.broadcast %cst : f32 to vector<8x128xf32>
    %35 = arith.maximumf %33, %34 : vector<8x128xf32>
    %36 = arith.truncf %35 : vector<8x128xf32> to vector<8x128xbf16>
    %c1 = arith.constant 1 : index
    %c0_6 = arith.constant 0 : index
    %c0_7 = arith.constant 0 : index
    %37 = vector.load %arg2[%c1, %c0_6, %c0_7] : memref<3x128x128xbf16, #tpu.memory_space<vmem>>, vector<1x128x128xbf16>
    %38 = vector.shape_cast %37 : vector<1x128x128xbf16> to vector<128x128xbf16>
    %cst_8 = arith.constant dense<0.000000e+00> : vector<8x128xf32>
    %39 = tpu.matmul %36, %38, %cst_8 {dimension_numbers = #tpu.dot_dimension_numbers<[1], [0], [0], [1], [0, 0, 1, 1], [], []>} : vector<8x128xbf16>, vector<128x128xbf16>, vector<8x128xf32> -> vector<8x128xf32>
    %40 = vector.extract_strided_slice %1 {offsets = [1, 0], sizes = [1, 128], strides = [1, 1]} : vector<8x128xf32> to vector<1x128xf32>
    %41 = vector.broadcast %40 : vector<1x128xf32> to vector<8x128xf32>
    %42 = arith.addf %39, %41 : vector<8x128xf32>
    %cst_9 = arith.constant 0.000000e+00 : f32
    %43 = vector.broadcast %cst_9 : f32 to vector<8x128xf32>
    %44 = arith.maximumf %42, %43 : vector<8x128xf32>
    %45 = arith.truncf %44 : vector<8x128xf32> to vector<8x128xbf16>
    %c2 = arith.constant 2 : index
    %c0_10 = arith.constant 0 : index
    %c0_11 = arith.constant 0 : index
    %46 = vector.load %arg2[%c2, %c0_10, %c0_11] : memref<3x128x128xbf16, #tpu.memory_space<vmem>>, vector<1x128x128xbf16>
    %47 = vector.shape_cast %46 : vector<1x128x128xbf16> to vector<128x128xbf16>
    %cst_12 = arith.constant dense<0.000000e+00> : vector<8x128xf32>
    %48 = tpu.matmul %45, %47, %cst_12 {dimension_numbers = #tpu.dot_dimension_numbers<[1], [0], [0], [1], [0, 0, 1, 1], [], []>} : vector<8x128xbf16>, vector<128x128xbf16>, vector<8x128xf32> -> vector<8x128xf32>
    %49 = vector.extract_strided_slice %1 {offsets = [2, 0], sizes = [1, 128], strides = [1, 1]} : vector<8x128xf32> to vector<1x128xf32>
    %50 = vector.broadcast %49 : vector<1x128xf32> to vector<8x128xf32>
    %51 = arith.addf %48, %50 : vector<8x128xf32>
    %52 = tpu.iota {dimensions = array<i32: 1>} : vector<1x128xi32>
    %c2_i32 = arith.constant 2 : i32
    %53 = vector.broadcast %c2_i32 : i32 to vector<1x128xi32>
    %54 = arith.cmpi slt, %52, %53 : vector<1x128xi32>
    %cst_13 = arith.constant 0xFF800000 : f32
    %55 = vector.shape_cast %54 : vector<1x128xi1> to vector<1x128xi1>
    %56 = vector.broadcast %55 : vector<1x128xi1> to vector<8x128xi1>
    %57 = vector.broadcast %cst_13 : f32 to vector<8x128xf32>
    %58 = arith.select %56, %51, %57 : vector<8x128xi1>, vector<8x128xf32>
    %cst_14 = arith.constant dense<0xFF800000> : vector<8xf32>
    %59 = vector.multi_reduction <maximumf>, %58, %cst_14 [1] : vector<8x128xf32> to vector<8xf32>
    %60 = vector.shape_cast %59 : vector<8xf32> to vector<8x1xf32>
    %61 = vector.broadcast %60 : vector<8x1xf32> to vector<8x128xf32>
    %62 = arith.subf %58, %61 : vector<8x128xf32>
    %63 = math.exp %62 : vector<8x128xf32>
    %cst_15 = arith.constant dense<0.000000e+00> : vector<8xf32>
    %64 = vector.multi_reduction <add>, %63, %cst_15 [1] : vector<8x128xf32> to vector<8xf32>
    %65 = vector.shape_cast %64 : vector<8xf32> to vector<8x1xf32>
    %66 = tpu.reciprocal %65 {approx = true} : vector<8x1xf32> -> vector<8x1xf32>
    %67 = vector.broadcast %66 : vector<8x1xf32> to vector<8x128xf32>
    %68 = arith.mulf %63, %67 : vector<8x128xf32>
    %c2_i32_16 = arith.constant 2 : i32
    %69 = vector.broadcast %c2_i32_16 : i32 to vector<1x128xi32>
    %70 = arith.cmpi eq, %52, %69 : vector<1x128xi32>
    %71 = vector.shape_cast %70 : vector<1x128xi1> to vector<1x128xi1>
    %72 = vector.broadcast %71 : vector<1x128xi1> to vector<8x128xi1>
    %73 = arith.select %72, %51, %68 : vector<8x128xi1>, vector<8x128xf32>
    %c0_17 = arith.constant 0 : index
    %c0_18 = arith.constant 0 : index
    %74 = vector.load %arg4[%c0_17, %c0_18] : memref<8x128xf32, #tpu.memory_space<vmem>>, vector<8x128xf32>
    tpu.vector_store %arg4[%c0_17, %c0_18], %73 {strides = array<i32>} : memref<8x128xf32, #tpu.memory_space<vmem>>, vector<8x128xf32>,
    return
  }
  func.func @transform_0(%arg0: i32) -> (i32, i32) {
    %c0_i32 = arith.constant 0 : i32
    %c0_i32_0 = arith.constant 0 : i32
    return %arg0, %c0_i32 : i32, i32
  }
  func.func @transform_1(%arg0: i32) -> (i32, i32, i32) {
    %c0_i32 = arith.constant 0 : i32
    %c0_i32_0 = arith.constant 0 : i32
    %c0_i32_1 = arith.constant 0 : i32
    %c0_i32_2 = arith.constant 0 : i32
    return %c0_i32, %c0_i32_0, %c0_i32_1 : i32, i32, i32
  }
  func.func @transform_2(%arg0: i32) -> (i32, i32) {
    %c0_i32 = arith.constant 0 : i32
    %c0_i32_0 = arith.constant 0 : i32
    %c0_i32_1 = arith.constant 0 : i32
    return %c0_i32, %c0_i32_0 : i32, i32
  }
  func.func @transform_3(%arg0: i32) -> (i32, i32) {
    %c0_i32 = arith.constant 0 : i32
    %c0_i32_0 = arith.constant 0 : i32
    return %arg0, %c0_i32 : i32, i32
  }
}

</mosaic_0001>

<bundles_post_ra>
// kernel: tpu_custom_call.1
= control target key start
LH: loop header
LB: loop body
LE: loop exit
PB: predicated region body
PF: predicated region fallthrough
CT: control target
= control target key end

     0   :  { %8 = vsyncpa [#allocation3], 0  ;;  %s571_s0 = inlined_call_operand.vmem [shape: f32[8,4], index: 0, kind: input, shape index: {}]   ;;  %s572_s1 = inlined_call_operand.hbm [shape: bf16[3,128,128], index: 1, kind: input, shape index: {}]   ;;  %s573_s2 = inlined_call_operand.vmem [shape: f32[8,128], index: 2, kind: input, shape index: {}]   ;;  %s574_s3 = inlined_call_operand.hbm [shape: f32[8,128], index: 3, kind: output, shape index: {}]  }
   0x1   :  { %9 = vsyncpa [#allocation4], 0  ;;  %s493_s12 = smov [#allocation2]   ;;  %s445_s16 = scalar_lea.hbm %s572_s1, 3072 }
   0x2   :  { %s17_s13 = sshll.u32 %s493_s12, 4  ;;  %p446_p0 = scmp.ne.s32.totalorder %s572_s1, %s445_s16  ;;  %s18_s13 = int_to_ptr.vmem [resolvable:$true] %s17_s13 }
   0x3   :  { %p449_p1 = scmp.lt.u32.totalorder %s445_s16, %s572_s1 }
   0x5   :  { %p451_p2 = pnand %p449_p1, %p446_p0 }
   0x7   :  { %454 = shalt.err (!%p451_p2)
}
   0x8   :  { %s455_s21 = scalar_lea.vmem %s18_s13, 3072  ;;  %p460_p4 = scmp.lt.s32.totalorder %s18_s13, %s18_s13 }
   0x9   :  { %p456_p3 = scmp.ne.s32.totalorder %s18_s13, %s455_s21  ;;  %p461_p5 = scmp.lt.s32.totalorder %s455_s21, %s455_s21 }
   0xb   :  { %p462_p6 = por %p461_p5, %p460_p4 }
   0xd   :  { %p463_p7 = pnand %p462_p6, %p456_p3 }
   0xf   :  { %466 = shalt.err (!%p463_p7)
}
  0x10   :  { %s494_s22 = smov 64   ;;  %s495_s23 = smov 4  }
  0x11   :  { %23 = dma.hbm_to_vmem [thread:$0]  %s572_s1, 3072, %s18_s13, [#allocation3], %s494_s22, %s494_s22, %s495_s23  }
  0x12   :  { %489 = dma.done.wait [#allocation3], 3072  }
  0x13   :  { %490 = vsyncadd [#allocation3], 4294964224  ;;  %v496_v0 = vmov 0   ;;  %v497_v1 = vmov 2   ;;  %v498_v2 = vmov 0.0   ;;  %v30_v3 = vld [vmem:[%s571_s0] sm:$0xff]  ;;  %v39_v20 = vlaneseq }
  0x14   :  { %420 = vset.pattern.permute.xlu0 %v496_v0  ;;  %422 = vset.pattern.permute.xlu1 %v497_v1  ;;  %v425_v4 = vld [vmem:[#allocation2 + $0x40] sm:$0xff]   ;;  %v426_v5 = vld [vmem:[#allocation2 + $0x48] sm:$0xff]   ;;  %v499_v6 = vmov 1   ;;  %v500_v7 = vmov 3   ;;  %v427_v8 = vld [vmem:[#allocation2 + $0x50] sm:$0xff]   ;;  %vm501_vm0 = vmmov 0  }
  0x15   :  { %370 = vmatprep.subr.bf16.mxu0 %v498_v2  ;;  %390 = vmatprep.subr.bf16.mxu1 %v498_v2  ;;  %v428_v9 = vld [vmem:[#allocation2 + $0x58] sm:$0xff]   ;;  %v429_v10 = vld [vmem:[#allocation2 + $0x60] sm:$0xff]   ;;  %v430_v11 = vld [vmem:[#allocation2 + $0x68] sm:$0xff]   ;;  %v40_v21 = vshrl.u32 %v39_v20, 7  ;;  %v302_v58 = vand.u32 127, %v39_v20 }
  0x16   :  { %36 = vperm.xlu0 %420, %v30_v3   ;;  %55 = vperm.xlu1 %422, %v30_v3   ;;  %v433_v12 = vld [vmem:[#allocation2 + $0x80] sm:$0xff]   ;;  %v434_v13 = vld [vmem:[#allocation2 + $0x88] sm:$0xff]   ;;  %v431_v14 = vld [vmem:[#allocation2 + $0x70] sm:$0xff]  }
  0x17   :  { %371 = vmatpush3.bf16.msra.mxu0 %v425_v4  ;;  %386 = vmatprep.mubr.msk.bf16.mxu0 %vm501_vm0, %v498_v2  ;;  %v435_v15 = vld [vmem:[#allocation2 + $0x90] sm:$0xff]   ;;  %v432_v16 = vld [vmem:[#allocation2 + $0x78] sm:$0xff]   ;;  %v437_v18 = vld [vmem:[#allocation2 + $0xa0] sm:$0xff]   ;;  %v41_v24 = vsub.s32 0, %v40_v21  ;;  %v50_v25 = vsub.s32 1, %v40_v21  ;;  %v60_v27 = vsub.s32 2, %v40_v21 }
  0x18   :  { %372 = vmatprep.subr.bf16.mxu0 %v498_v2  ;;  %406 = vmatprep.mubr.msk.bf16.mxu1 %vm501_vm0, %v498_v2  ;;  %v436_v17 = vld [vmem:[#allocation2 + $0x98] sm:$0xff]   ;;  %v438_v19 = vld [vmem:[#allocation2 + $0xa8] sm:$0xff]   ;;  %v32_v22 = vld [vmem:[#allocation2] sm:$0xf]  ;;  %v70_v29 = vsub.s32 3, %v40_v21  ;;  %vm303_vm1 = vcmp.lt.s32.totalorder %v302_v58, 2 }
  0x19   :  { %391 = vmatpush3.bf16.msra.mxu1 %v433_v12  ;;  %v33_v23 = vunpack.c.l.bf16 %v32_v22  ;;  %v31_v38 = vld [vmem:[%s573_s2] sm:$0xff]  ;;  %v440_v49 = vld [vmem:[#allocation2 + $0xb8] sm:$0xff]   ;;  %s502_s2 = smov [#allocation5]   ;;  %vm316_vm2 = vcmp.eq.s32.totalorder %v302_v58, 2 }
  0x1a   :  { %421 = vset.pattern.permute.xlu0 %v499_v6  ;;  %423 = vset.pattern.permute.xlu1 %v500_v7  ;;  %v77_v42 = vrot.slane %v31_v38, %v41_v24  ;;  %v439_v48 = vld [vmem:[#allocation2 + $0xb0] sm:$0xff]   ;;  %v101_v50 = vrot.slane %v31_v38, %v50_v25  ;;  %v212_v59 = vrot.slane %v31_v38, %v60_v27  ;;  %s327_s28 = sshll.u32 %s502_s2, 4  ;;  %s328_s28 = int_to_ptr.vmem [resolvable:$true] %s327_s28 }
  0x1b   :  { %45 = vperm.xlu0 %421, %v30_v3   ;;  %65 = vperm.xlu1 %423, %v30_v3   ;;  %v42_v30 = vrot.slane %v33_v23, %v41_v24  ;;  %v51_v31 = vrot.slane %v33_v23, %v50_v25  ;;  %v61_v32 = vrot.slane %v33_v23, %v60_v27  ;;  %s467_s29 = scalar_lea.vmem %s328_s28, 128  ;;  %p472_p9 = scmp.lt.s32.totalorder %s328_s28, %s328_s28 }
  0x1c   :  { %373 = vmatpush3.bf16.msra.mxu0 %v426_v5  ;;  %392 = vmatprep.subr.bf16.mxu1 %v498_v2  ;;  %v71_v33 = vrot.slane %v33_v23, %v70_v29  ;;  %p468_p8 = scmp.ne.s32.totalorder %s328_s28, %s467_s29  ;;  %p473_p10 = scmp.lt.s32.totalorder %s467_s29, %s467_s29 }
  0x1d   :  { %374 = vmatprep.subr.bf16.mxu0 %v498_v2  ;;  %393 = vmatpush3.bf16.msra.mxu1 %v434_v13 }
  0x1e   :  { %394 = vmatprep.subr.bf16.mxu1 %v498_v2  ;;  %p474_p11 = por %p473_p10, %p472_p9 }
  0x1f   :  { %424 = vset.pattern.permute.xlu0 %v500_v7 }
  0x20   :  { %375 = vmatpush3.bf16.msra.mxu0 %v427_v8  ;;  %p475_p12 = pnand %p474_p11, %p468_p8 }
  0x21   :  { %376 = vmatprep.subr.bf16.mxu0 %v498_v2  ;;  %395 = vmatpush3.bf16.msra.mxu1 %v435_v15 }
  0x22   :  { %396 = vmatprep.subr.bf16.mxu1 %v498_v2 }
  0x24   :  { %377 = vmatpush3.bf16.msra.mxu0 %v428_v9 }
  0x25   :  { %378 = vmatprep.subr.bf16.mxu0 %v498_v2  ;;  %397 = vmatpush3.bf16.msra.mxu1 %v436_v17 }
  0x26   :  { %398 = vmatprep.subr.bf16.mxu1 %v498_v2 }
  0x28   :  { %379 = vmatpush3.bf16.msra.mxu0 %v429_v10 }
  0x29   :  { %380 = vmatprep.subr.bf16.mxu0 %v498_v2  ;;  %399 = vmatpush3.bf16.msra.mxu1 %v437_v18 }
  0x2a   :  { %400 = vmatprep.subr.bf16.mxu1 %v498_v2 }
  0x2c   :  { %381 = vmatpush3.bf16.msra.mxu0 %v430_v11 }
  0x2d   :  { %382 = vmatprep.subr.bf16.mxu0 %v498_v2  ;;  %401 = vmatpush3.bf16.msra.mxu1 %v438_v19 }
  0x2e   :  { %402 = vmatprep.subr.bf16.mxu1 %v498_v2 }
  0x30   :  { %383 = vmatpush3.bf16.msra.mxu0 %v431_v14 }
  0x31   :  { %384 = vmatprep.subr.bf16.mxu0 %v498_v2  ;;  %403 = vmatpush3.bf16.msra.mxu1 %v439_v48 }
  0x32   :  { %404 = vmatprep.subr.bf16.mxu1 %v498_v2 }
  0x34   :  { %385 = vmatpush3.bf16.msra.mxu0 %v432_v16 }
  0x35   :  { %405 = vmatpush3.bf16.msra.mxu1 %v440_v49 }
  0x95   :  { %v37_v26 = vpop.permute.xlu0 %36  ;;  %v56_v28 = vpop.permute.xlu1 %55 }
  0x96   :  { %v43_v36 = vmul.f32 %v42_v30, %v37_v26  ;;  %v62_v39 = vmul.f32 %v61_v32, %v56_v28 }
  0x9a   :  { %v46_v34 = vpop.permute.xlu0 %45  ;;  %v66_v35 = vpop.permute.xlu1 %65 }
  0x9b   :  { %v52_v37 = vmul.f32 %v51_v31, %v46_v34  ;;  %v72_v41 = vmul.f32 %v71_v33, %v66_v35 }
  0x9d   :  { %v53_v40 = vadd.f32 %v52_v37, %v43_v36 }
  0x9f   :  { %v63_v43 = vadd.f32 %v62_v39, %v53_v40 }
  0xa1   :  { %v73_v44 = vadd.f32 %v72_v41, %v63_v43 }
  0xa3   :  { %v78_v45 = vadd.f32 %v77_v42, %v73_v44 }
  0xa5   :  { %v79_v46 = vmax.f32 %v78_v45, 0.0 }
  0xa7   :  { %v80_v47 = vpack.c.bf16 %v79_v46, %v79_v46 }
  0xa9   :  { %387 = vmatmul.mubr.bf16.vlgmr.msra.gmra.mrb[0].mxu0 %v80_v47 }
 0x17c   :  { %v184_v51 = vpop.f32.mrb[0].mxu0 }
 0x17d   :  { %v185_v52 = vadd.f32 %v184_v51, %v101_v50  ;;  %v388_v53 = vpop.f32.mrb[1].mxu0 }
 0x17e   :  { %v187_v54 = vpop.f32.mrb[2].mxu0 }
 0x17f   :  { %v190_v55 = vmax.f32 %v185_v52, 0.0  ;;  %v389_v56 = vpop.f32.mrb[3].mxu0 }
 0x181   :  { %v191_v57 = vpack.c.bf16 %v190_v55, %v190_v55 }
 0x183   :  { %407 = vmatmul.mubr.bf16.vlgmr.msra.gmra.mrb[0].mxu1 %v191_v57 }
 0x256   :  { %v295_v60 = vpop.f32.mrb[0].mxu1 }
 0x257   :  { %v296_v61 = vadd.f32 %v295_v60, %v212_v59  ;;  %v408_v62 = vpop.f32.mrb[1].mxu1 }
 0x258   :  { %v298_v63 = vpop.f32.mrb[2].mxu1 }
 0x259   :  { %v409_v0 = vpop.f32.mrb[3].mxu1  ;;  %v306_v1 = vsel %vm303_vm1, %v296_v61, -inf }
 0x25a   :  { %307 = vmax.xlane.f32.xlu1 %v306_v1 }
 0x2e7   :  { %v308_v2 = vpop.xlane.xlu1 %307 }
 0x2e8   :  { %v309_v3 = vsub.f32 %v306_v1, %v308_v2 }
 0x2ea   :  { %v310_v4 = vmul.f32 1.442695, %v309_v3 }
 0x2ec   :  { %441 = vpow2.f32 %v310_v4 }
 0x2f6   :  { %v442_v5 = vpop.eup %441 }
 0x2f7   :  { %312 = vadd.xlane.f32.xlu0 %v442_v5 }
 0x384   :  { %v313_v6 = vpop.xlane.xlu0 %312 }
 0x385   :  { %443 = vrcp.f32 %v313_v6 }
 0x38f   :  { %v444_v7 = vpop.eup %443 }
 0x390   :  { %v315_v8 = vmul.f32 %v444_v7, %v442_v5 }
 0x392   :  { %v319_v9 = vsel %vm316_vm2, %v296_v61, %v315_v8 }
 0x393   :  { %320 = vst [vmem:[#allocation5] sm:$0xff] %v319_v9 }
 0x394   :  { %478 = shalt.err (!%p475_p12)
}
 0x395   :  { %s479_s5 = scalar_lea.hbm %s574_s3, 128 }
 0x396   :  { %p480_p13 = scmp.ne.s32.totalorder %s574_s3, %s479_s5  ;;  %p483_p0 = scmp.lt.u32.totalorder %s479_s5, %s574_s3 }
 0x398   :  { %p485_p1 = pnand %p483_p0, %p480_p13 }
 0x39a   :  { %488 = shalt.err (!%p485_p1)
}
 0x39b   :  { %330 = dma.vmem_to_hbm [thread:$0]  %s328_s28, 128, %s574_s3, [#allocation4]  }
 0x39c   :  { %491 = dma.done.wait [#allocation4], 128  }
 0x39d   :  { %492 = vsyncadd [#allocation4], 4294967168 }
 0x39e   :  { %334 = vsyncpa [#allocation3], 1 }
 0x39f   :  { %335 = vsyncpa [#allocation4], 1 }

</bundles_post_ra>
